<compile_context>
chip_gen: v5e
topology: v5e:2x2
jax: 0.10.0
libtpu: 0.0.40
codegen_flags: <defaults>
</compile_context>

<pallas_src>
import jax
import jax.numpy as jnp
import numpy as np
from jax.experimental import pallas as pl
from jax.experimental.pallas import tpu as pltpu


def _critic_kernel(x_ref, a_ref,
                   w1x_ref, w1a_ref, b1_ref,
                   w2_ref, b2_ref,
                   w3_ref, b3_ref,
                   wq_ref, bq_ref,
                   o_ref):
    # fc1 over the (virtually) concatenated input; bf16 operands, f32 accumulate.
    h = (jnp.dot(x_ref[...], w1x_ref[...], preferred_element_type=jnp.float32)
         + jnp.dot(a_ref[...], w1a_ref[...], preferred_element_type=jnp.float32)
         + b1_ref[...])
    h = jnp.maximum(h, 0.0).astype(jnp.bfloat16)

    # fc2
    h = jnp.dot(h, w2_ref[...], preferred_element_type=jnp.float32) + b2_ref[...]
    h = jnp.maximum(h, 0.0).astype(jnp.bfloat16)

    # fc3
    h = jnp.dot(h, w3_ref[...], preferred_element_type=jnp.float32) + b3_ref[...]
    h = jnp.maximum(h, 0.0)  # keep f32 for the reduction

    # q_out: N=1 matmul rewritten as a VPU multiply + lane reduction (XLU/VPU
    # slots have slack while the MXU runs the 256x256 layers).
    q = jnp.sum(h * wq_ref[...].astype(jnp.float32), axis=-1, keepdims=True)
    q = q + bq_ref[...]
    o_ref[...] = q.astype(o_ref.dtype)


def _round_up(n, m):
    return ((n + m - 1) // m) * m


def critic_forward(x, actions, params, *, tile_b=None):
    """x: [B, obs+goal] f32, actions: [B, action] f32 -> q: [B, 1] f32."""
    B, d_x = x.shape
    d_a = actions.shape[1]
    H = params["w2"].shape[0]

    if tile_b is None:
        # Large multiple of 128/256 for big batches; round small batches to 8.
        tile_b = min(512, _round_up(B, 8))

    Bp = _round_up(B, tile_b)
    if Bp != B:
        pad = Bp - B
        x = jnp.pad(x, ((0, pad), (0, 0)))
        actions = jnp.pad(actions, ((0, pad), (0, 0)))

    xb = x.astype(jnp.bfloat16)
    ab = actions.astype(jnp.bfloat16)

    batch_map = lambda i: (i, 0)   # tiled along batch
    const_map = lambda i: (0, 0)   # weights/biases resident across grid steps

    out = pl.pallas_call(
        _critic_kernel,
        out_shape=jax.ShapeDtypeStruct((Bp, 1), jnp.float32),
        grid_spec=pltpu.PrefetchScalarGridSpec(
            num_scalar_prefetch=0,
            grid=(Bp // tile_b,),
            in_specs=[
                pl.BlockSpec((tile_b, d_x), batch_map),   # x tile
                pl.BlockSpec((tile_b, d_a), batch_map),   # actions tile
                pl.BlockSpec((d_x, H), const_map),        # w1x (bf16)
                pl.BlockSpec((d_a, H), const_map),        # w1a (bf16, /max folded)
                pl.BlockSpec((1, H), const_map),          # b1  (f32)
                pl.BlockSpec((H, H), const_map),          # w2  (bf16)
                pl.BlockSpec((1, H), const_map),          # b2  (f32)
                pl.BlockSpec((H, H), const_map),          # w3  (bf16)
                pl.BlockSpec((1, H), const_map),          # b3  (f32)
                pl.BlockSpec((1, H), const_map),          # wq row (bf16)
                pl.BlockSpec((1, 1), const_map),          # bq  (f32)
            ],
            out_specs=pl.BlockSpec((tile_b, 1), batch_map),
        ),
        compiler_params=pltpu.CompilerParams(
            dimension_semantics=("parallel",)),  # megacore sharding on v7x
    )(xb, ab,
      params["w1x"], params["w1a"], params["b1"],
      params["w2"], params["b2"],
      params["w3"], params["b3"],
      params["wq_row"], params["bq"])

    return out[:B]


def init_params(key, obs, goal, action, max_action, hidden=256):
    """Deterministic init mimicking PyTorch nn.Linear default
    (uniform(-1/sqrt(fan_in), 1/sqrt(fan_in))). Weights stored (in, out),
    cast to bf16; biases kept f32 (added to the f32 accumulator).
    1/max_action is folded into the action rows of W1."""
    assert np.ndim(max_action) == 0, "max_action must be a scalar"
    max_action = float(max_action)

    d_in1 = obs + goal + action

    def linear(k, fan_in, fan_out):
        kw, kb = jax.random.split(k)
        bound = 1.0 / np.sqrt(fan_in)
        w = jax.random.uniform(kw, (fan_in, fan_out), jnp.float32, -bound, bound)
        b = jax.random.uniform(kb, (1, fan_out), jnp.float32, -bound, bound)
        return w, b

    k1, k2, k3, k4 = jax.random.split(key, 4)
    w1, b1 = linear(k1, d_in1, hidden)
    w2, b2 = linear(k2, hidden, hidden)
    w3, b3 = linear(k3, hidden, hidden)
    wq, bq = linear(k4, hidden, 1)

    d_x = obs + goal
    bf16 = jnp.bfloat16
    # TODO(synk): on v7x the two 256x256 layers could additionally be fp8-quantized.
    return {
        "w1x": w1[:d_x, :].astype(bf16),                         # rows multiplying x
        "w1a": (w1[d_x:, :] / max_action).astype(bf16),          # rows multiplying actions, /max folded in
        "b1": b1,
        "w2": w2.astype(bf16), "b2": b2,
        "w3": w3.astype(bf16), "b3": b3,
        "wq_row": wq.reshape(1, hidden).astype(bf16),            # (1, 256) for VPU reduction
        "bq": bq.reshape(1, 1),                                  # (1, 1) f32
    }


def _reference(x, actions, params):
    """Pure-JAX reference mirroring the kernel's precision pipeline."""
    xb = x.astype(jnp.bfloat16)
    ab = actions.astype(jnp.bfloat16)
    h = (jnp.dot(xb, params["w1x"], preferred_element_type=jnp.float32)
         + jnp.dot(ab, params["w1a"], preferred_element_type=jnp.float32)
         + params["b1"])
    h = jnp.maximum(h, 0.0).astype(jnp.bfloat16)
    h = jnp.dot(h, params["w2"], preferred_element_type=jnp.float32) + params["b2"]
    h = jnp.maximum(h, 0.0).astype(jnp.bfloat16)
    h = jnp.dot(h, params["w3"], preferred_element_type=jnp.float32) + params["b3"]
    h = jnp.maximum(h, 0.0)
    q = jnp.sum(h * params["wq_row"].astype(jnp.float32), axis=-1, keepdims=True)
    return q + params["bq"]


if __name__ == "__main__":
    # env_params: obs=10, goal=3, action=4, action_max=1.0 ; batch=8
    obs, goal, action = 10, 3, 4
    max_action = 1.0
    B = 8

    key = jax.random.PRNGKey(0)
    kp, kx, ka = jax.random.split(key, 3)
    params = init_params(kp, obs, goal, action, max_action)

    x = jax.random.normal(kx, (B, obs + goal), jnp.float32)
    actions = jax.random.normal(ka, (B, action), jnp.float32)

    q = critic_forward(x, actions, params)
    q = jax.block_until_ready(q)

    q_ref = _reference(x, actions, params)
    assert q.shape == (B, 1)
    assert np.allclose(np.asarray(q), np.asarray(q_ref), rtol=2e-2, atol=2e-2), (
        np.max(np.abs(np.asarray(q) - np.asarray(q_ref))))

    print("KERNEL_OK")
</pallas_src>

<mosaic_0001>
module attributes {stable_mosaic.version = 11 : i64} {
  func.func @_critic_kernel(%arg0: i32, %arg1: memref<8x13xbf16, #tpu.memory_space<vmem>>, %arg2: memref<8x4xbf16, #tpu.memory_space<vmem>>, %arg3: memref<13x256xbf16, #tpu.memory_space<vmem>>, %arg4: memref<4x256xbf16, #tpu.memory_space<vmem>>, %arg5: memref<1x256xf32, #tpu.memory_space<vmem>>, %arg6: memref<256x256xbf16, #tpu.memory_space<vmem>>, %arg7: memref<1x256xf32, #tpu.memory_space<vmem>>, %arg8: memref<256x256xbf16, #tpu.memory_space<vmem>>, %arg9: memref<1x256xf32, #tpu.memory_space<vmem>>, %arg10: memref<1x256xbf16, #tpu.memory_space<vmem>>, %arg11: memref<1x1xf32, #tpu.memory_space<vmem>>, %arg12: memref<8x1xf32, #tpu.memory_space<vmem>>) attributes {dimension_semantics = [#tpu.dimension_semantics<parallel>], iteration_bounds = array<i64: 1>, scalar_prefetch = 0 : i64, scratch_operands = 0 : i64, tpu.core_type = #tpu.core_type<tc>, window_params = [{transform_indices = @transform_0, window_bounds = array<i64: 8, 13>}, {transform_indices = @transform_1, window_bounds = array<i64: 8, 4>}, {pipeline_mode = #tpu.pipeline_mode<synchronous>, transform_indices = @transform_2, window_bounds = array<i64: 13, 256>}, {pipeline_mode = #tpu.pipeline_mode<synchronous>, transform_indices = @transform_3, window_bounds = array<i64: 4, 256>}, {pipeline_mode = #tpu.pipeline_mode<synchronous>, transform_indices = @transform_4, window_bounds = array<i64: 1, 256>}, {pipeline_mode = #tpu.pipeline_mode<synchronous>, transform_indices = @transform_5, window_bounds = array<i64: 256, 256>}, {pipeline_mode = #tpu.pipeline_mode<synchronous>, transform_indices = @transform_6, window_bounds = array<i64: 1, 256>}, {pipeline_mode = #tpu.pipeline_mode<synchronous>, transform_indices = @transform_7, window_bounds = array<i64: 256, 256>}, {pipeline_mode = #tpu.pipeline_mode<synchronous>, transform_indices = @transform_8, window_bounds = array<i64: 1, 256>}, {pipeline_mode = #tpu.pipeline_mode<synchronous>, transform_indices = @transform_9, window_bounds = array<i64: 1, 256>}, {pipeline_mode = #tpu.pipeline_mode<synchronous>, transform_indices = @transform_10, window_bounds = array<i64: 1, 1>}, {transform_indices = @transform_11, window_bounds = array<i64: 8, 1>}]} {
    %c0 = arith.constant 0 : index
    %c0_0 = arith.constant 0 : index
    %0 = vector.load %arg1[%c0, %c0_0] : memref<8x13xbf16, #tpu.memory_space<vmem>>, vector<8x13xbf16>
    %c0_1 = arith.constant 0 : index
    %c0_2 = arith.constant 0 : index
    %1 = vector.load %arg3[%c0_1, %c0_2] : memref<13x256xbf16, #tpu.memory_space<vmem>>, vector<13x256xbf16>
    %cst = arith.constant dense<0.000000e+00> : vector<8x256xf32>
    %2 = tpu.matmul %0, %1, %cst {dimension_numbers = #tpu.dot_dimension_numbers<[1], [0], [0], [1], [0, 0, 1, 1], [], []>} : vector<8x13xbf16>, vector<13x256xbf16>, vector<8x256xf32> -> vector<8x256xf32>
    %c0_3 = arith.constant 0 : index
    %c0_4 = arith.constant 0 : index
    %3 = vector.load %arg2[%c0_3, %c0_4] : memref<8x4xbf16, #tpu.memory_space<vmem>>, vector<8x4xbf16>
    %c0_5 = arith.constant 0 : index
    %c0_6 = arith.constant 0 : index
    %4 = vector.load %arg4[%c0_5, %c0_6] : memref<4x256xbf16, #tpu.memory_space<vmem>>, vector<4x256xbf16>
    %cst_7 = arith.constant dense<0.000000e+00> : vector<8x256xf32>
    %5 = tpu.matmul %3, %4, %cst_7 {dimension_numbers = #tpu.dot_dimension_numbers<[1], [0], [0], [1], [0, 0, 1, 1], [], []>} : vector<8x4xbf16>, vector<4x256xbf16>, vector<8x256xf32> -> vector<8x256xf32>
    %6 = arith.addf %2, %5 : vector<8x256xf32>
    %c0_8 = arith.constant 0 : index
    %c0_9 = arith.constant 0 : index
    %7 = vector.load %arg5[%c0_8, %c0_9] : memref<1x256xf32, #tpu.memory_space<vmem>>, vector<1x256xf32>
    %8 = vector.broadcast %7 : vector<1x256xf32> to vector<8x256xf32>
    %9 = arith.addf %6, %8 : vector<8x256xf32>
    %cst_10 = arith.constant 0.000000e+00 : f32
    %10 = vector.broadcast %cst_10 : f32 to vector<8x256xf32>
    %11 = arith.maximumf %9, %10 : vector<8x256xf32>
    %12 = arith.truncf %11 : vector<8x256xf32> to vector<8x256xbf16>
    %c0_11 = arith.constant 0 : index
    %c0_12 = arith.constant 0 : index
    %13 = vector.load %arg6[%c0_11, %c0_12] : memref<256x256xbf16, #tpu.memory_space<vmem>>, vector<256x256xbf16>
    %cst_13 = arith.constant dense<0.000000e+00> : vector<8x256xf32>
    %14 = tpu.matmul %12, %13, %cst_13 {dimension_numbers = #tpu.dot_dimension_numbers<[1], [0], [0], [1], [0, 0, 1, 1], [], []>} : vector<8x256xbf16>, vector<256x256xbf16>, vector<8x256xf32> -> vector<8x256xf32>
    %c0_14 = arith.constant 0 : index
    %c0_15 = arith.constant 0 : index
    %15 = vector.load %arg7[%c0_14, %c0_15] : memref<1x256xf32, #tpu.memory_space<vmem>>, vector<1x256xf32>
    %16 = vector.broadcast %15 : vector<1x256xf32> to vector<8x256xf32>
    %17 = arith.addf %14, %16 : vector<8x256xf32>
    %cst_16 = arith.constant 0.000000e+00 : f32
    %18 = vector.broadcast %cst_16 : f32 to vector<8x256xf32>
    %19 = arith.maximumf %17, %18 : vector<8x256xf32>
    %20 = arith.truncf %19 : vector<8x256xf32> to vector<8x256xbf16>
    %c0_17 = arith.constant 0 : index
    %c0_18 = arith.constant 0 : index
    %21 = vector.load %arg8[%c0_17, %c0_18] : memref<256x256xbf16, #tpu.memory_space<vmem>>, vector<256x256xbf16>
    %cst_19 = arith.constant dense<0.000000e+00> : vector<8x256xf32>
    %22 = tpu.matmul %20, %21, %cst_19 {dimension_numbers = #tpu.dot_dimension_numbers<[1], [0], [0], [1], [0, 0, 1, 1], [], []>} : vector<8x256xbf16>, vector<256x256xbf16>, vector<8x256xf32> -> vector<8x256xf32>
    %c0_20 = arith.constant 0 : index
    %c0_21 = arith.constant 0 : index
    %23 = vector.load %arg9[%c0_20, %c0_21] : memref<1x256xf32, #tpu.memory_space<vmem>>, vector<1x256xf32>
    %24 = vector.broadcast %23 : vector<1x256xf32> to vector<8x256xf32>
    %25 = arith.addf %22, %24 : vector<8x256xf32>
    %cst_22 = arith.constant 0.000000e+00 : f32
    %26 = vector.broadcast %cst_22 : f32 to vector<8x256xf32>
    %27 = arith.maximumf %25, %26 : vector<8x256xf32>
    %c0_23 = arith.constant 0 : index
    %c0_24 = arith.constant 0 : index
    %28 = vector.load %arg10[%c0_23, %c0_24] : memref<1x256xbf16, #tpu.memory_space<vmem>>, vector<1x256xbf16>
    %29 = arith.extf %28 : vector<1x256xbf16> to vector<1x256xf32>
    %30 = vector.broadcast %29 : vector<1x256xf32> to vector<8x256xf32>
    %31 = arith.mulf %27, %30 : vector<8x256xf32>
    %cst_25 = arith.constant dense<0.000000e+00> : vector<8xf32>
    %32 = vector.multi_reduction <add>, %31, %cst_25 [1] : vector<8x256xf32> to vector<8xf32>
    %33 = vector.shape_cast %32 : vector<8xf32> to vector<8x1xf32>
    %c0_26 = arith.constant 0 : index
    %c0_27 = arith.constant 0 : index
    %34 = vector.load %arg11[%c0_26, %c0_27] : memref<1x1xf32, #tpu.memory_space<vmem>>, vector<1x1xf32>
    %35 = vector.broadcast %34 : vector<1x1xf32> to vector<8x1xf32>
    %36 = arith.addf %33, %35 : vector<8x1xf32>
    %c0_28 = arith.constant 0 : index
    %c0_29 = arith.constant 0 : index
    %37 = vector.load %arg12[%c0_28, %c0_29] : memref<8x1xf32, #tpu.memory_space<vmem>>, vector<8x1xf32>
    tpu.vector_store %arg12[%c0_28, %c0_29], %36 {strides = array<i32>} : memref<8x1xf32, #tpu.memory_space<vmem>>, vector<8x1xf32>,
    return
  }
  func.func @transform_0(%arg0: i32) -> (i32, i32) {
    %c0_i32 = arith.constant 0 : i32
    %c0_i32_0 = arith.constant 0 : i32
    return %arg0, %c0_i32 : i32, i32
  }
  func.func @transform_1(%arg0: i32) -> (i32, i32) {
    %c0_i32 = arith.constant 0 : i32
    %c0_i32_0 = arith.constant 0 : i32
    return %arg0, %c0_i32 : i32, i32
  }
  func.func @transform_2(%arg0: i32) -> (i32, i32) {
    %c0_i32 = arith.constant 0 : i32
    %c0_i32_0 = arith.constant 0 : i32
    %c0_i32_1 = arith.constant 0 : i32
    return %c0_i32, %c0_i32_0 : i32, i32
  }
  func.func @transform_3(%arg0: i32) -> (i32, i32) {
    %c0_i32 = arith.constant 0 : i32
    %c0_i32_0 = arith.constant 0 : i32
    %c0_i32_1 = arith.constant 0 : i32
    return %c0_i32, %c0_i32_0 : i32, i32
  }
  func.func @transform_4(%arg0: i32) -> (i32, i32) {
    %c0_i32 = arith.constant 0 : i32
    %c0_i32_0 = arith.constant 0 : i32
    %c0_i32_1 = arith.constant 0 : i32
    return %c0_i32, %c0_i32_0 : i32, i32
  }
  func.func @transform_5(%arg0: i32) -> (i32, i32) {
    %c0_i32 = arith.constant 0 : i32
    %c0_i32_0 = arith.constant 0 : i32
    %c0_i32_1 = arith.constant 0 : i32
    return %c0_i32, %c0_i32_0 : i32, i32
  }
  func.func @transform_6(%arg0: i32) -> (i32, i32) {
    %c0_i32 = arith.constant 0 : i32
    %c0_i32_0 = arith.constant 0 : i32
    %c0_i32_1 = arith.constant 0 : i32
    return %c0_i32, %c0_i32_0 : i32, i32
  }
  func.func @transform_7(%arg0: i32) -> (i32, i32) {
    %c0_i32 = arith.constant 0 : i32
    %c0_i32_0 = arith.constant 0 : i32
    %c0_i32_1 = arith.constant 0 : i32
    return %c0_i32, %c0_i32_0 : i32, i32
  }
  func.func @transform_8(%arg0: i32) -> (i32, i32) {
    %c0_i32 = arith.constant 0 : i32
    %c0_i32_0 = arith.constant 0 : i32
    %c0_i32_1 = arith.constant 0 : i32
    return %c0_i32, %c0_i32_0 : i32, i32
  }
  func.func @transform_9(%arg0: i32) -> (i32, i32) {
    %c0_i32 = arith.constant 0 : i32
    %c0_i32_0 = arith.constant 0 : i32
    %c0_i32_1 = arith.constant 0 : i32
    return %c0_i32, %c0_i32_0 : i32, i32
  }
  func.func @transform_10(%arg0: i32) -> (i32, i32) {
    %c0_i32 = arith.constant 0 : i32
    %c0_i32_0 = arith.constant 0 : i32
    %c0_i32_1 = arith.constant 0 : i32
    return %c0_i32, %c0_i32_0 : i32, i32
  }
  func.func @transform_11(%arg0: i32) -> (i32, i32) {
    %c0_i32 = arith.constant 0 : i32
    %c0_i32_0 = arith.constant 0 : i32
    return %arg0, %c0_i32 : i32, i32
  }
}

</mosaic_0001>

<bundles_post_ra>
// kernel: tpu_custom_call.1
= control target key start
LH: loop header
LB: loop body
LE: loop exit
PB: predicated region body
PF: predicated region fallthrough
CT: control target
= control target key end

     0   :  { %s1293_s0 = inlined_call_operand.vmem [shape: bf16[8,13], index: 0, kind: input, shape index: {}]   ;;  %s1294_s1 = inlined_call_operand.vmem [shape: bf16[8,4], index: 1, kind: input, shape index: {}]   ;;  %s1295_s2 = inlined_call_operand.hbm [shape: bf16[13,256], index: 2, kind: input, shape index: {}]   ;;  %s1296_s3 = inlined_call_operand.hbm [shape: bf16[4,256], index: 3, kind: input, shape index: {}]   ;;  %s1297_s4 = inlined_call_operand.vmem [shape: f32[1,256], index: 4, kind: input, shape index: {}]   ;;  %s1298_s5 = inlined_call_operand.hbm [shape: bf16[256,256], index: 5, kind: input, shape index: {}]   ;;  %s1299_s6 = inlined_call_operand.vmem [shape: f32[1,256], index: 6, kind: input, shape index: {}]   ;;  %s1300_s7 = inlined_call_operand.hbm [shape: bf16[256,256], index: 7, kind: input, shape index: {}]   ;;  %s1301_s8 = inlined_call_operand.vmem [shape: f32[1,256], index: 8, kind: input, shape index: {}]   ;;  %s1302_s9 = inlined_call_operand.vmem [shape: bf16[1,256], index: 9, kind: input, shape index: {}]   ;;  %s1303_s10 = inlined_call_operand.<no memory space> [shape: f32[1,1], index: 10, kind: input, shape index: {}]   ;;  %s1304_s11 = inlined_call_operand.vmem [shape: f32[8,1], index: 11, kind: output, shape index: {}]  }
   0x1   :  { %v16_v0 = vstv %s1303_s10 }
   0x2   :  { %17 = vst [vmem:[#allocation2] sm:$0x1] %v16_v0 }
   0x3   :  { %18 = vsyncpa [#allocation4], 0 }
   0x4   :  { %19 = vsyncpa [#allocation6], 0  ;;  %s43_s21 = sshll.u32 %s1296_s3, 4  ;;  %s44_s21 = int_to_ptr.hbm [resolvable:$true] %s43_s21 }
   0x5   :  { %20 = vsyncpa [#allocation9], 0  ;;  %s1184_s22 = smov [#allocation5]   ;;  %s29_s26 = sshll.u32 %s1295_s2, 4  ;;  %s30_s26 = int_to_ptr.hbm [resolvable:$true] %s29_s26 }
   0x6   :  { %s45_s23 = sshll.u32 %s1184_s22, 4  ;;  %s1185_s27 = smov [#allocation3]   ;;  %s46_s23 = int_to_ptr.vmem [resolvable:$true] %s45_s23 }
   0x7   :  { %48 = dma.hbm_to_vmem [thread:$0]  %s44_s21, 64, %s46_s23, [#allocation6]  }
   0x8   :  { %s31_s10 = sshll.u32 %s1185_s27, 4  ;;  %s1186_s28 = smov 128   ;;  %s32_s10 = int_to_ptr.vmem [resolvable:$true] %s31_s10 }
   0x9   :  { %s1187_s29 = smov 8   ;;  %s55_s3 = sshll.u32 %s1298_s5, 4  ;;  %s56_s3 = int_to_ptr.hbm [resolvable:$true] %s55_s3 }
   0xa   :  { %37 = dma.hbm_to_vmem [thread:$0]  %s30_s26, 256, %s32_s10, [#allocation4], %s1186_s28, %s1186_s28, %s1187_s29  }
   0xb   :  { %s1188_s13 = smov [#allocation7]   ;;  %s70_s2 = sshll.u32 %s1300_s7, 4  ;;  %s71_s2 = int_to_ptr.hbm [resolvable:$true] %s70_s2 }
   0xc   :  { %s57_s14 = sshll.u32 %s1188_s13, 4  ;;  %s1189_s17 = smov [#allocation8]   ;;  %s58_s14 = int_to_ptr.vmem [resolvable:$true] %s57_s14 }
   0xd   :  { %63 = dma.hbm_to_vmem [thread:$0]  %s56_s3, 4096, %s58_s14, [#allocation6], %s1186_s28, %s1186_s28, %s1187_s29  }
   0xe   :  { %s72_s18 = sshll.u32 %s1189_s17, 4  ;;  %s73_s18 = int_to_ptr.vmem [resolvable:$true] %s72_s18 }
   0xf   :  { %78 = dma.hbm_to_vmem [thread:$0]  %s71_s2, 4096, %s73_s18, [#allocation9], %s1186_s28, %s1186_s28, %s1187_s29  }
  0x10   :  { %1178 = dma.done.wait [#allocation4], 256  }
  0x11   :  { %1179 = vsyncadd [#allocation4], 4294967040 }
  0x12   :  { %1180 = dma.done.wait [#allocation6], 4160  }
  0x13   :  { %1181 = vsyncadd [#allocation6], 4294963136 }
  0x14   :  { %1182 = dma.done.wait [#allocation9], 4096  }
  0x15   :  { %1183 = vsyncadd [#allocation9], 4294963200  ;;  %vm158_vm0 = vcmask 1045504   ;;  %vm159_vm1 = vcmask 1046528   ;;  %v1190_v1 = vmov 65535   ;;  %vm154_vm2 = vcmask 105472  }
  0x16   :  { %v160_v2 = vsel %vm158_vm0, 4294967295, %v1190_v1  ;;  %v744_v4 = vld [vmem:[#allocation3] sm:$0xf]  ;;  %v1009_v5 = vld [vmem:[#allocation3 + $0x4] sm:$0x70]  ;;  %vm115_vm3 = vcmask 1041408  }
  0x17   :  { %v161_v3 = vsel %vm159_vm1, %v160_v2, 0  ;;  %v1008_v6 = vld [vmem:[#allocation3 + $0x4] sm:$0xf]  ;;  %v745_v7 = vor.u32 %v1009_v5, %v744_v4  ;;  %v746_v8 = vld [vmem:[#allocation3 + $0x8] sm:$0x70]  ;;  %vm111_vm4 = vcmask 31744  }
  0x18   :  { %v106_v9 = vld [vmem:[#allocation5] sm:$0xf]  ;;  %v749_v10 = vor.u32 %v1008_v6, %v746_v8  ;;  %v102_v12 = vld [vmem:[%s1293_s0] sm:$0xf]  ;;  %v810_v13 = vld [vmem:[#allocation7 + $0x70] sm:$0xf] }
  0x19   :  { %108 = vst [vmem:[#allocation1] ss:$4 sm:$0xff] %v106_v9  ;;  %v163_v11 = vand.u32 %v745_v7, %v161_v3  ;;  %v1025_v14 = vld [vmem:[#allocation7 + $0x74] sm:$0xf0]  ;;  %v1024_v16 = vld [vmem:[#allocation7 + $0x74] sm:$0xf] }
  0x1a   :  { %v166_v15 = vand.u32 %v749_v10, %v161_v3  ;;  %v812_v17 = vld [vmem:[#allocation7 + $0x78] sm:$0xf0]  ;;  %v1040_v18 = vld [vmem:[#allocation7 + $0xf4] sm:$0xf]  ;;  %v874_v19 = vld [vmem:[#allocation7 + $0xf0] sm:$0xf]  ;;  %v811_v29 = vor.u32 %v1025_v14, %v810_v13 }
  0x1b   :  { %175 = vmatpush.bf16.msra.mxu2 %v163_v11  ;;  %v1041_v20 = vld [vmem:[#allocation7 + $0xf4] sm:$0xf0]  ;;  %v815_v21 = vor.u32 %v1024_v16, %v812_v17  ;;  %v876_v22 = vld [vmem:[#allocation7 + $0xf8] sm:$0xf0]  ;;  %v1022_v24 = vld [vmem:[#allocation7 + $0x64] sm:$0xf] }
  0x1c   :  { %188 = vmatpush.bf16.msra.mxu3 %v166_v15  ;;  %v879_v23 = vor.u32 %v1040_v18, %v876_v22  ;;  %v802_v25 = vld [vmem:[#allocation7 + $0x60] sm:$0xf]  ;;  %v804_v26 = vld [vmem:[#allocation7 + $0x68] sm:$0xf0]  ;;  %v1038_v27 = vld [vmem:[#allocation7 + $0xe4] sm:$0xf]  ;;  %v875_v30 = vor.u32 %v1041_v20, %v874_v19 }
  0x1d   :  { %v868_v28 = vld [vmem:[#allocation7 + $0xe8] sm:$0xf0]  ;;  %v1023_v31 = vld [vmem:[#allocation7 + $0x64] sm:$0xf0]  ;;  %v866_v32 = vld [vmem:[#allocation7 + $0xe0] sm:$0xf]  ;;  %v807_v36 = vor.u32 %v1022_v24, %v804_v26 }
  0x1e   :  { %750 = vmatmul.msk.bf16.vlgmr.msra.gmra.mxu2 %vm154_vm2, %v102_v12  ;;  %v1039_v33 = vld [vmem:[#allocation7 + $0xe4] sm:$0xf0]  ;;  %v871_v37 = vor.u32 %v1038_v27, %v868_v28  ;;  %v105_v40 = vld [vmem:[%s1294_s1] sm:$0xf]  ;;  %v1020_v41 = vld [vmem:[#allocation7 + $0x54] sm:$0xf]  ;;  %v803_v45 = vor.u32 %v1023_v31, %v802_v25 }
  0x1f   :  { %430 = vmatpush.bf16.msrb.mxu2 %v815_v21  ;;  %751 = vmatmul.msk.bf16.vlgmr.msra.gmra.mxu3 %vm154_vm2, %v102_v12  ;;  %v796_v42 = vld [vmem:[#allocation7 + $0x58] sm:$0xf0]  ;;  %v1036_v43 = vld [vmem:[#allocation7 + $0xd4] sm:$0xf]  ;;  %v867_v46 = vor.u32 %v1039_v33, %v866_v32  ;;  %v794_v47 = vld [vmem:[#allocation7 + $0x50] sm:$0xf] }
  0x20   :  { %443 = vmatpush.bf16.msrb.mxu3 %v879_v23  ;;  %v109_v34 = vld.sshfl [vmem:[#allocation1] sm:$0xff pattern:$0x73625140]  ;;  %v110_v35 = vld.sshfl [vmem:[#allocation1 + $0x8] sm:$0xff pattern:$0x73625140]  ;;  %v799_v51 = vor.u32 %v1020_v41, %v796_v42 }
  0x21   :  { %v116_v38 = vsel %vm115_vm3, %v109_v34, 0  ;;  %v118_v39 = vsel %vm115_vm3, %v110_v35, 0  ;;  %v860_v44 = vld [vmem:[#allocation7 + $0xd8] sm:$0xf0]  ;;  %v1021_v48 = vld [vmem:[#allocation7 + $0x54] sm:$0xf0] }
  0x22   :  { %127 = vmatpush.bf16.msra.mxu0 %v116_v38  ;;  %140 = vmatpush.bf16.msra.mxu1 %v118_v39  ;;  %v858_v49 = vld [vmem:[#allocation7 + $0xd0] sm:$0xf]  ;;  %v1037_v50 = vld [vmem:[#allocation7 + $0xd4] sm:$0xf0]  ;;  %v863_v52 = vor.u32 %v1036_v43, %v860_v44  ;;  %v1018_v53 = vld [vmem:[#allocation7 + $0x44] sm:$0xf]  ;;  %v795_v57 = vor.u32 %v1021_v48, %v794_v47 }
  0x23   :  { %431 = vmatpush.bf16.msrb.mxu2 %v807_v36  ;;  %v788_v54 = vld [vmem:[#allocation7 + $0x48] sm:$0xf0]  ;;  %v1034_v55 = vld [vmem:[#allocation7 + $0xc4] sm:$0xf]  ;;  %v859_v58 = vor.u32 %v1037_v50, %v858_v49  ;;  %v786_v59 = vld [vmem:[#allocation7 + $0x40] sm:$0xf] }
  0x24   :  { %444 = vmatpush.bf16.msrb.mxu3 %v871_v37  ;;  %v852_v56 = vld [vmem:[#allocation7 + $0xc8] sm:$0xf0]  ;;  %v1019_v60 = vld [vmem:[#allocation7 + $0x44] sm:$0xf0]  ;;  %v850_v61 = vld [vmem:[#allocation7 + $0xc0] sm:$0xf]  ;;  %v791_v63 = vor.u32 %v1018_v53, %v788_v54 }
  0x25   :  { %740 = vmatmul.msk.bf16.vlgmr.msra.gmra.mxu0 %vm111_vm4, %v105_v40  ;;  %741 = vmatmul.msk.bf16.vlgmr.msra.gmra.mxu1 %vm111_vm4, %v105_v40  ;;  %v1035_v62 = vld [vmem:[#allocation7 + $0xc4] sm:$0xf0]  ;;  %v855_v0 = vor.u32 %v1034_v55, %v852_v56  ;;  %v1016_v1 = vld [vmem:[#allocation7 + $0x34] sm:$0xf]  ;;  %v780_v2 = vld [vmem:[#allocation7 + $0x38] sm:$0xf0]  ;;  %v787_v5 = vor.u32 %v1019_v60, %v786_v59 }
  0x26   :  { %404 = vmatpush.bf16.msrb.mxu0 %v811_v29  ;;  %417 = vmatpush.bf16.msrb.mxu1 %v875_v30  ;;  %v1032_v3 = vld [vmem:[#allocation7 + $0xb4] sm:$0xf]  ;;  %v844_v4 = vld [vmem:[#allocation7 + $0xb8] sm:$0xf0]  ;;  %v851_v6 = vor.u32 %v1035_v62, %v850_v61  ;;  %v778_v7 = vld [vmem:[#allocation7 + $0x30] sm:$0xf]  ;;  %v783_v11 = vor.u32 %v1016_v1, %v780_v2 }
  0x27   :  { %432 = vmatpush.bf16.msrb.mxu2 %v799_v51  ;;  %v1017_v8 = vld [vmem:[#allocation7 + $0x34] sm:$0xf0]  ;;  %v842_v9 = vld [vmem:[#allocation7 + $0xb0] sm:$0xf]  ;;  %v847_v12 = vor.u32 %v1032_v3, %v844_v4  ;;  %v1014_v13 = vld [vmem:[#allocation7 + $0x24] sm:$0xf] }
  0x28   :  { %445 = vmatpush.bf16.msrb.mxu3 %v863_v52  ;;  %v1033_v10 = vld [vmem:[#allocation7 + $0xb4] sm:$0xf0]  ;;  %v772_v14 = vld [vmem:[#allocation7 + $0x28] sm:$0xf0]  ;;  %v1030_v15 = vld [vmem:[#allocation7 + $0xa4] sm:$0xf]  ;;  %v779_v17 = vor.u32 %v1017_v8, %v778_v7 }
  0x29   :  { %v836_v16 = vld [vmem:[#allocation7 + $0xa8] sm:$0xf0]  ;;  %v843_v18 = vor.u32 %v1033_v10, %v842_v9  ;;  %v770_v19 = vld [vmem:[#allocation7 + $0x20] sm:$0xf]  ;;  %v1015_v20 = vld [vmem:[#allocation7 + $0x24] sm:$0xf0]  ;;  %v775_v23 = vor.u32 %v1014_v13, %v772_v14 }
  0x2a   :  { %405 = vmatpush.bf16.msrb.mxu0 %v803_v45  ;;  %418 = vmatpush.bf16.msrb.mxu1 %v867_v46  ;;  %v834_v21 = vld [vmem:[#allocation7 + $0xa0] sm:$0xf]  ;;  %v1031_v22 = vld [vmem:[#allocation7 + $0xa4] sm:$0xf0]  ;;  %v839_v24 = vor.u32 %v1030_v15, %v836_v16  ;;  %v771_v25 = vor.u32 %v1015_v20, %v770_v19  ;;  %v762_v27 = vld [vmem:[#allocation7 + $0x10] sm:$0xf] }
  0x2b   :  { %433 = vmatpush.bf16.msrb.mxu2 %v791_v63  ;;  %v835_v26 = vor.u32 %v1031_v22, %v834_v21  ;;  %v1013_v28 = vld [vmem:[#allocation7 + $0x14] sm:$0xf0]  ;;  %v826_v29 = vld [vmem:[#allocation7 + $0x90] sm:$0xf]  ;;  %v1012_v32 = vld [vmem:[#allocation7 + $0x14] sm:$0xf] }
  0x2c   :  { %446 = vmatpush.bf16.msrb.mxu3 %v855_v0  ;;  %v763_v30 = vor.u32 %v1013_v28, %v762_v27  ;;  %v1029_v31 = vld [vmem:[#allocation7 + $0x94] sm:$0xf0]  ;;  %v764_v34 = vld [vmem:[#allocation7 + $0x18] sm:$0xf0]  ;;  %v1028_v35 = vld [vmem:[#allocation7 + $0x94] sm:$0xf] }
  0x2d   :  { %v827_v33 = vor.u32 %v1029_v31, %v826_v29  ;;  %v767_v36 = vor.u32 %v1012_v32, %v764_v34  ;;  %v828_v37 = vld [vmem:[#allocation7 + $0x98] sm:$0xf0]  ;;  %v754_v39 = vld [vmem:[#allocation7] sm:$0xf]  ;;  %v1011_v40 = vld [vmem:[#allocation7 + $0x4] sm:$0xf0] }
  0x2e   :  { %406 = vmatpush.bf16.msrb.mxu0 %v795_v57  ;;  %419 = vmatpush.bf16.msrb.mxu1 %v859_v58  ;;  %v831_v38 = vor.u32 %v1028_v35, %v828_v37  ;;  %v818_v41 = vld [vmem:[#allocation7 + $0x80] sm:$0xf]  ;;  %v755_v42 = vor.u32 %v1011_v40, %v754_v39  ;;  %v1027_v43 = vld [vmem:[#allocation7 + $0x84] sm:$0xf0]  ;;  %v1010_v44 = vld [vmem:[#allocation7 + $0x4] sm:$0xf] }
  0x2f   :  { %434 = vmatpush.bf16.msrb.mxu2 %v783_v11  ;;  %v756_v45 = vld [vmem:[#allocation7 + $0x8] sm:$0xf0]  ;;  %v819_v46 = vor.u32 %v1027_v43, %v818_v41  ;;  %v1026_v48 = vld [vmem:[#allocation7 + $0x84] sm:$0xf]  ;;  %v938_v51 = vld [vmem:[#allocation8 + $0x70] sm:$0xf] }
  0x30   :  { %447 = vmatpush.bf16.msrb.mxu3 %v847_v12  ;;  %v759_v47 = vor.u32 %v1010_v44, %v756_v45  ;;  %v820_v49 = vld [vmem:[#allocation7 + $0x88] sm:$0xf0]  ;;  %v1057_v52 = vld [vmem:[#allocation8 + $0x74] sm:$0xf0]  ;;  %v1056_v53 = vld [vmem:[#allocation8 + $0x74] sm:$0xf] }
  0x31   :  { %v823_v50 = vor.u32 %v1026_v48, %v820_v49  ;;  %v939_v54 = vor.u32 %v1057_v52, %v938_v51  ;;  %v940_v55 = vld [vmem:[#allocation8 + $0x78] sm:$0xf0]  ;;  %v930_v56 = vld [vmem:[#allocation8 + $0x60] sm:$0xf]  ;;  %v1055_v57 = vld [vmem:[#allocation8 + $0x64] sm:$0xf0] }
  0x32   :  { %407 = vmatpush.bf16.msrb.mxu0 %v787_v5  ;;  %420 = vmatpush.bf16.msrb.mxu1 %v851_v6  ;;  %v943_v58 = vor.u32 %v1056_v53, %v940_v55  ;;  %v1054_v59 = vld [vmem:[#allocation8 + $0x64] sm:$0xf]  ;;  %v932_v60 = vld [vmem:[#allocation8 + $0x68] sm:$0xf0]  ;;  %v1002_v61 = vld [vmem:[#allocation8 + $0xf0] sm:$0xf]  ;;  %v931_v62 = vor.u32 %v1055_v57, %v930_v56 }
  0x33   :  { %435 = vmatpush.bf16.msrb.mxu2 %v775_v23  ;;  %v1073_v63 = vld [vmem:[#allocation8 + $0xf4] sm:$0xf0]  ;;  %v1072_v0 = vld [vmem:[#allocation8 + $0xf4] sm:$0xf]  ;;  %v1004_v1 = vld [vmem:[#allocation8 + $0xf8] sm:$0xf0]  ;;  %v935_v2 = vor.u32 %v1054_v59, %v932_v60 }
  0x34   :  { %448 = vmatpush.bf16.msrb.mxu3 %v839_v24  ;;  %v1003_v3 = vor.u32 %v1073_v63, %v1002_v61  ;;  %v1007_v4 = vor.u32 %v1072_v0, %v1004_v1  ;;  %v922_v5 = vld [vmem:[#allocation8 + $0x50] sm:$0xf]  ;;  %v1053_v6 = vld [vmem:[#allocation8 + $0x54] sm:$0xf0]  ;;  %v1052_v7 = vld [vmem:[#allocation8 + $0x54] sm:$0xf] }
  0x35   :  { %v924_v8 = vld [vmem:[#allocation8 + $0x58] sm:$0xf0]  ;;  %v994_v9 = vld [vmem:[#allocation8 + $0xe0] sm:$0xf]  ;;  %v1071_v10 = vld [vmem:[#allocation8 + $0xe4] sm:$0xf0]  ;;  %v923_v14 = vor.u32 %v1053_v6, %v922_v5 }
  0x36   :  { %408 = vmatpush.bf16.msrb.mxu0 %v779_v17  ;;  %421 = vmatpush.bf16.msrb.mxu1 %v843_v18  ;;  %v995_v11 = vor.u32 %v1071_v10, %v994_v9  ;;  %v1070_v12 = vld [vmem:[#allocation8 + $0xe4] sm:$0xf]  ;;  %v996_v13 = vld [vmem:[#allocation8 + $0xe8] sm:$0xf0]  ;;  %v914_v16 = vld [vmem:[#allocation8 + $0x40] sm:$0xf]  ;;  %v927_v18 = vor.u32 %v1052_v7, %v924_v8 }
  0x37   :  { %436 = vmatpush.bf16.msrb.mxu2 %v767_v36  ;;  %v999_v15 = vor.u32 %v1070_v12, %v996_v13  ;;  %v1051_v17 = vld [vmem:[#allocation8 + $0x44] sm:$0xf0]  ;;  %v986_v19 = vld [vmem:[#allocation8 + $0xd0] sm:$0xf]  ;;  %v1069_v20 = vld [vmem:[#allocation8 + $0xd4] sm:$0xf0] }
  0x38   :  { %449 = vmatpush.bf16.msrb.mxu3 %v831_v38  ;;  %v1068_v21 = vld [vmem:[#allocation8 + $0xd4] sm:$0xf]  ;;  %v1050_v22 = vld [vmem:[#allocation8 + $0x44] sm:$0xf]  ;;  %v916_v23 = vld [vmem:[#allocation8 + $0x48] sm:$0xf0]  ;;  %v915_v28 = vor.u32 %v1051_v17, %v914_v16 }
  0x39   :  { %v988_v24 = vld [vmem:[#allocation8 + $0xd8] sm:$0xf0]  ;;  %v978_v27 = vld [vmem:[#allocation8 + $0xc0] sm:$0xf]  ;;  %v1067_v29 = vld [vmem:[#allocation8 + $0xc4] sm:$0xf0]  ;;  %v919_v32 = vor.u32 %v1050_v22, %v916_v23 }
  0x3a   :  { %409 = vmatpush.bf16.msrb.mxu0 %v771_v25  ;;  %422 = vmatpush.bf16.msrb.mxu1 %v835_v26  ;;  %v987_v25 = vor.u32 %v1069_v20, %v986_v19  ;;  %v991_v26 = vor.u32 %v1068_v21, %v988_v24  ;;  %v980_v31 = vld [vmem:[#allocation8 + $0xc8] sm:$0xf0]  ;;  %v1049_v34 = vld [vmem:[#allocation8 + $0x34] sm:$0xf0]  ;;  %v1048_v35 = vld [vmem:[#allocation8 + $0x34] sm:$0xf]  ;;  %v979_v37 = vor.u32 %v1067_v29, %v978_v27 }
  0x3b   :  { %437 = vmatpush.bf16.msrb.mxu2 %v759_v47  ;;  %v908_v36 = vld [vmem:[#allocation8 + $0x38] sm:$0xf0]  ;;  %v898_v41 = vld [vmem:[#allocation8 + $0x20] sm:$0xf]  ;;  %v1046_v43 = vld [vmem:[#allocation8 + $0x24] sm:$0xf] }
  0x3c   :  { %450 = vmatpush.bf16.msrb.mxu3 %v823_v50  ;;  %v911_v40 = vor.u32 %v1048_v35, %v908_v36  ;;  %v900_v44 = vld [vmem:[#allocation8 + $0x28] sm:$0xf0]  ;;  %v194_v45 = vld [vmem:[%s1297_s4] sm:$0x3]  ;;  %v972_v6 = vld [vmem:[#allocation8 + $0xb8] sm:$0xf0] }
  0x3d   :  { %v903_v47 = vor.u32 %v1046_v43, %v900_v44  ;;  %v196_v50 = vperm.slane %v194_v45, 0  ;;  %v197_v51 = vperm.slane %v194_v45, 1  ;;  %v890_v8 = vld [vmem:[#allocation8 + $0x10] sm:$0xf]  ;;  %v1045_v9 = vld [vmem:[#allocation8 + $0x14] sm:$0xf0] }
  0x3e   :  { %410 = vmatpush.bf16.msrb.mxu0 %v763_v30  ;;  %423 = vmatpush.bf16.msrb.mxu1 %v827_v33  ;;  %v1066_v30 = vld [vmem:[#allocation8 + $0xc4] sm:$0xf]  ;;  %v906_v33 = vld [vmem:[#allocation8 + $0x30] sm:$0xf]  ;;  %v1044_v10 = vld [vmem:[#allocation8 + $0x14] sm:$0xf] }
  0x3f   :  { %684 = vmatpush.bf16.msra.mxu2 %v943_v58  ;;  %v983_v38 = vor.u32 %v1066_v30, %v980_v31  ;;  %v907_v39 = vor.u32 %v1049_v34, %v906_v33  ;;  %v892_v12 = vld [vmem:[#allocation8 + $0x18] sm:$0xf0]  ;;  %v1062_v16 = vld [vmem:[#allocation8 + $0xa4] sm:$0xf]  ;;  %v882_v20 = vld [vmem:[#allocation8] sm:$0xf] }
  0x40   :  { %697 = vmatpush.bf16.msra.mxu3 %v1007_v4  ;;  %v1064_v4 = vld [vmem:[#allocation8 + $0xb4] sm:$0xf]  ;;  %v895_v13 = vor.u32 %v1044_v10, %v892_v12  ;;  %v1043_v21 = vld [vmem:[#allocation8 + $0x4] sm:$0xf0]  ;;  %v1042_v22 = vld [vmem:[#allocation8 + $0x4] sm:$0xf] }
  0x41   :  { %v975_v7 = vor.u32 %v1064_v4, %v972_v6  ;;  %v883_v23 = vor.u32 %v1043_v21, %v882_v20  ;;  %v884_v24 = vld [vmem:[#allocation8 + $0x8] sm:$0xf0]  ;;  %v1061_v27 = vld [vmem:[#allocation8 + $0x94] sm:$0xf0]  ;;  %v1060_v29 = vld [vmem:[#allocation8 + $0x94] sm:$0xf] }
  0x42   :  { %411 = vmatpush.bf16.msrb.mxu0 %v755_v42  ;;  %424 = vmatpush.bf16.msrb.mxu1 %v819_v46  ;;  %v1047_v42 = vld [vmem:[#allocation8 + $0x24] sm:$0xf0]  ;;  %v956_v30 = vld [vmem:[#allocation8 + $0x98] sm:$0xf0]  ;;  %v1058_v34 = vld [vmem:[#allocation8 + $0x84] sm:$0xf] }
  0x43   :  { %685 = vmatpush.bf16.msra.mxu2 %v935_v2  ;;  %v899_v46 = vor.u32 %v1047_v42, %v898_v41  ;;  %v970_v2 = vld [vmem:[#allocation8 + $0xb0] sm:$0xf]  ;;  %v959_v31 = vor.u32 %v1060_v29, %v956_v30  ;;  %v1059_v33 = vld [vmem:[#allocation8 + $0x84] sm:$0xf0]  ;;  %v948_v36 = vld [vmem:[#allocation8 + $0x88] sm:$0xf0] }
  0x44   :  { %698 = vmatpush.bf16.msra.mxu3 %v999_v15  ;;  %v1063_v15 = vld [vmem:[#allocation8 + $0xa4] sm:$0xf0]  ;;  %vm731_vm5 = vcmask 7168  }
  0x46   :  { %658 = vmatpush.bf16.msra.mxu0 %v939_v54  ;;  %671 = vmatpush.bf16.msra.mxu1 %v1003_v3  ;;  %v1065_v3 = vld [vmem:[#allocation8 + $0xb4] sm:$0xf0] }
  0x47   :  { %686 = vmatpush.bf16.msra.mxu2 %v927_v18  ;;  %v971_v5 = vor.u32 %v1065_v3, %v970_v2  ;;  %v964_v18 = vld [vmem:[#allocation8 + $0xa8] sm:$0xf0] }
  0x48   :  { %699 = vmatpush.bf16.msra.mxu3 %v991_v26  ;;  %v967_v19 = vor.u32 %v1062_v16, %v964_v18  ;;  %v954_v26 = vld [vmem:[#allocation8 + $0x90] sm:$0xf] }
  0x4a   :  { %659 = vmatpush.bf16.msra.mxu0 %v931_v62  ;;  %672 = vmatpush.bf16.msra.mxu1 %v995_v11  ;;  %v891_v11 = vor.u32 %v1045_v9, %v890_v8 }
  0x4b   :  { %687 = vmatpush.bf16.msra.mxu2 %v919_v32  ;;  %v946_v32 = vld [vmem:[#allocation8 + $0x80] sm:$0xf] }
  0x4c   :  { %700 = vmatpush.bf16.msra.mxu3 %v983_v38  ;;  %v947_v35 = vor.u32 %v1059_v33, %v946_v32  ;;  %v238_v38 = vld [vmem:[%s1299_s6] sm:$0x3] }
  0x4d   :  { %v241_v44 = vperm.slane %v238_v38, 1 }
  0x4e   :  { %660 = vmatpush.bf16.msra.mxu0 %v923_v14  ;;  %673 = vmatpush.bf16.msra.mxu1 %v987_v25  ;;  %v962_v14 = vld [vmem:[#allocation8 + $0xa0] sm:$0xf]  ;;  %v887_v25 = vor.u32 %v1042_v22, %v884_v24 }
  0x4f   :  { %688 = vmatpush.bf16.msra.mxu2 %v911_v40  ;;  %v963_v17 = vor.u32 %v1063_v15, %v962_v14 }
  0x50   :  { %701 = vmatpush.bf16.msra.mxu3 %v975_v7 }
  0x52   :  { %661 = vmatpush.bf16.msra.mxu0 %v915_v28  ;;  %674 = vmatpush.bf16.msra.mxu1 %v979_v37  ;;  %v955_v28 = vor.u32 %v1061_v27, %v954_v26  ;;  %v951_v37 = vor.u32 %v1058_v34, %v948_v36 }
  0x53   :  { %689 = vmatpush.bf16.msra.mxu2 %v903_v47 }
  0x54   :  { %702 = vmatpush.bf16.msra.mxu3 %v967_v19  ;;  %v1081_v19 = vld [vmem:[#allocation2] ss:$0 sm:$0xff] }
  0x56   :  { %662 = vmatpush.bf16.msra.mxu0 %v907_v39  ;;  %675 = vmatpush.bf16.msra.mxu1 %v971_v5  ;;  %v240_v39 = vperm.slane %v238_v38, 0 }
  0x57   :  { %690 = vmatpush.bf16.msra.mxu2 %v895_v13 }
  0x58   :  { %703 = vmatpush.bf16.msra.mxu3 %v959_v31 }
  0x5a   :  { %663 = vmatpush.bf16.msra.mxu0 %v899_v46  ;;  %676 = vmatpush.bf16.msra.mxu1 %v963_v17 }
  0x5b   :  { %691 = vmatpush.bf16.msra.mxu2 %v887_v25 }
  0x5c   :  { %704 = vmatpush.bf16.msra.mxu3 %v951_v37 }
  0x5e   :  { %664 = vmatpush.bf16.msra.mxu0 %v891_v11  ;;  %677 = vmatpush.bf16.msra.mxu1 %v955_v28 }
  0x62   :  { %665 = vmatpush.bf16.msra.mxu0 %v883_v23  ;;  %678 = vmatpush.bf16.msra.mxu1 %v947_v35 }
  0xa1   :  { %v177_v52 = vpop.f32.mrf.mxu2 }
  0xa2   :  { %v129_v48 = vpop.f32.mrf.mxu0  ;;  %v142_v49 = vpop.f32.mrf.mxu1 }
  0xa3   :  { %v190_v53 = vpop.f32.mrf.mxu3  ;;  %v178_v54 = vadd.f32 %v177_v52, %v129_v48 }
  0xa4   :  { %v191_v55 = vadd.f32 %v190_v53, %v142_v49 }
  0xa5   :  { %v200_v56 = vadd.f32 %v196_v50, %v178_v54 }
  0xa6   :  { %v201_v57 = vadd.f32 %v197_v51, %v191_v55 }
  0xa7   :  { %v202_v58 = vmax.f32 %v200_v56, 0.0 }
  0xa8   :  { %v203_v59 = vmax.f32 %v201_v57, 0.0 }
  0xa9   :  { %v204_v60 = vpack.c.bf16 %v202_v58, %v202_v58  ;;  %v179_v0 = vpop.f32.mrf.mxu2  ;;  %v492_v58 = vld [vmem:[%s1301_s8] sm:$0x3] }
  0xaa   :  { %v205_v61 = vpack.c.bf16 %v203_v59, %v203_v59  ;;  %v131_v62 = vpop.f32.mrf.mxu0  ;;  %v144_v63 = vpop.f32.mrf.mxu1  ;;  %v712_v59 = vld [vmem:[%s1302_s9] sm:$0x3] }
  0xab   :  { %v192_v1 = vpop.f32.mrf.mxu3  ;;  %412 = vmatmul.bf16.vlgmr.msrb.gmra.mxu0 %v204_v60  ;;  %438 = vmatmul.bf16.vlgmr.msrb.gmra.mxu2 %v204_v60  ;;  %v494_v60 = vperm.slane %v492_v58, 0  ;;  %v713_v62 = vunpack.c.l.bf16 %v712_v59 }
  0xac   :  { %425 = vmatmul.bf16.vlgmr.msrb.gmra.mxu1 %v205_v61  ;;  %451 = vmatmul.bf16.vlgmr.msrb.gmra.mxu3 %v205_v61  ;;  %v495_v1 = vperm.slane %v492_v58, 1 }
  0xad   :  { %v715_v4 = vperm.slane %v713_v62, 0  ;;  %v716_v5 = vperm.slane %v713_v62, 2 }
  0xaf   :  { %v719_v11 = vperm.slane %v715_v4, 0  ;;  %v720_v12 = vperm.slane %v716_v5, 0 }
 0x128   :  { %v413_v40 = vpop.f32.mrf.mxu0 }
 0x129   :  { %v426_v41 = vpop.f32.mrf.mxu1  ;;  %v414_v42 = vadd.f32 %v413_v40, %v240_v39 }
 0x12b   :  { %v427_v43 = vadd.f32 %v426_v41, %v414_v42 }
 0x12d   :  { %v456_v45 = vmax.f32 %v427_v43, 0.0 }
 0x12e   :  { %v439_v47 = vpop.f32.mrf.mxu2 }
 0x12f   :  { %v458_v46 = vpack.c.bf16 %v456_v45, %v456_v45  ;;  %v452_v48 = vpop.f32.mrf.mxu3  ;;  %v440_v49 = vadd.f32 %v439_v47, %v241_v44 }
 0x130   :  { %v415_v50 = vpop.f32.mrf.mxu0 }
 0x131   :  { %v428_v51 = vpop.f32.mrf.mxu1  ;;  %666 = vmatmul.bf16.vlgmr.msra.gmra.mxu0 %v458_v46  ;;  %692 = vmatmul.bf16.vlgmr.msra.gmra.mxu2 %v458_v46  ;;  %v453_v52 = vadd.f32 %v452_v48, %v440_v49 }
 0x133   :  { %v457_v53 = vmax.f32 %v453_v52, 0.0 }
 0x135   :  { %v459_v54 = vpack.c.bf16 %v457_v53, %v457_v53 }
 0x136   :  { %v441_v55 = vpop.f32.mrf.mxu2 }
 0x137   :  { %v454_v56 = vpop.f32.mrf.mxu3  ;;  %679 = vmatmul.bf16.vlgmr.msra.gmra.mxu1 %v459_v54  ;;  %705 = vmatmul.bf16.vlgmr.msra.gmra.mxu3 %v459_v54 }
 0x1ae   :  { %v667_v57 = vpop.f32.mrf.mxu0 }
 0x1af   :  { %v668_v0 = vadd.f32 %v667_v57, %v494_v60 }
 0x1b4   :  { %v693_v61 = vpop.f32.mrf.mxu2  ;;  %v680_v63 = vpop.f32.mrf.mxu1 }
 0x1b5   :  { %v681_v3 = vadd.f32 %v680_v63, %v668_v0  ;;  %v694_v6 = vadd.f32 %v693_v61, %v495_v1 }
 0x1b6   :  { %v669_v2 = vpop.f32.mrf.mxu0 }
 0x1b7   :  { %v710_v8 = vmax.f32 %v681_v3, 0.0 }
 0x1b9   :  { %v721_v15 = vmul.f32 %v719_v11, %v710_v8 }
 0x1ba   :  { %v706_v7 = vpop.f32.mrf.mxu3 }
 0x1bb   :  { %v707_v9 = vadd.f32 %v706_v7, %v694_v6 }
 0x1bc   :  { %v695_v10 = vpop.f32.mrf.mxu2  ;;  %v682_v13 = vpop.f32.mrf.mxu1 }
 0x1bd   :  { %v711_v14 = vmax.f32 %v707_v9, 0.0 }
 0x1bf   :  { %v722_v16 = vmul.f32 %v720_v12, %v711_v14 }
 0x1c1   :  { %v723_v17 = vadd.f32 %v722_v16, %v721_v15 }
 0x1c2   :  { %v708_v18 = vpop.f32.mrf.mxu3 }
 0x1c3   :  { %724 = vadd.xlane.f32.xlu0 %v723_v17 }
 0x236   :  { %v725_v20 = vpop.xlane.xlu0 %724 }
 0x237   :  { %v730_v21 = vadd.f32 %v1081_v19, %v725_v20 }
 0x239   :  { %732 = vst.msk [vmem:[%s1304_s11] sm:$0xff] %vm731_vm5, %v730_v21 }
 0x23a   :  { %737 = vsyncpa [#allocation4], 1 }
 0x23b   :  { %738 = vsyncpa [#allocation6], 1 }
 0x23c   :  { %739 = vsyncpa [#allocation9], 1 }

</bundles_post_ra>
